<compile_context>
chip_gen: v7x
topology: tpu7x:2x2x1
jax: 0.10.0
libtpu: 0.0.40
codegen_flags: <defaults>
</compile_context>

<pallas_src>
import functools

import jax
import jax.numpy as jnp
from jax.experimental import pallas as pl
from jax.experimental.pallas import tpu as pltpu


def _dwsep_kernel(x_ref, taps_ref, mask_ref, bdw_ref, wpw_ref, bpw_ref, o_ref,
                  *, W):
    """Depthwise 3x3 + BN + ReLU, then pointwise 1x1 + BN + ReLU. VMEM-resident.

    x_ref:    (C_in, N)     channel-major input, N = TB*H*W (batch in lanes)
    taps_ref: (C_in, 9)     depthwise taps * BN scale (factorized, no planes)
    mask_ref: (9, N)        per-tap validity mask (0/1), zeroes padded taps
    bdw_ref:  (C_in, 1)     depthwise folded BN shift
    wpw_ref:  (C_out, C_in) pointwise weight * BN scale, bf16
    bpw_ref:  (C_out, 1)    pointwise folded BN shift
    o_ref:    (C_out, N)
    """
    x = x_ref[...]                                 # (C_in, N) f32
    taps = taps_ref[...]                           # (C_in, 9)
    mask = mask_ref[...]                           # (9, N)
    n = x.shape[-1]                                # static

    # --- depthwise 3x3, pad=1, stride=1 ------------------------------------
    # shifted[p] = x[(p + delta) % n]; every wrapped / wrong-row / cross-image
    # lane corresponds to an out-of-image tap and is zeroed by mask.
    # Accumulation order (k = 0..8) matches the reference for tight checking.
    acc = jnp.zeros_like(x)
    for k in range(9):
        dy, dx = divmod(k, 3)
        delta = (dy - 1) * W + (dx - 1)            # flattened source offset
        if delta == 0:
            contrib = x * taps[:, k:k + 1]         # center tap: mask is all-ones
        else:
            shifted = pltpu.roll(x, (-delta) % n, 1)      # XLU lane rotate
            contrib = (shifted * mask[k:k + 1, :]) * taps[:, k:k + 1]
        acc = acc + contrib
    feat = jnp.maximum(acc + bdw_ref[...], 0.0)    # (C_in, N) f32

    # --- pointwise 1x1 + BN + ReLU: one MXU matmul --------------------------
    # Explicit bf16 operands (native MXU on v6e/v7x), f32 accumulate.
    out = jnp.dot(wpw_ref[...], feat.astype(jnp.bfloat16),
                  preferred_element_type=jnp.float32)
    o_ref[...] = jnp.maximum(out + bpw_ref[...], 0.0).astype(o_ref.dtype)


def prepare_kernel_operands(params, H, W, tb):
    """One-time fold of weights + padding-validity mask into kernel operands.

    Hoisted out of the per-call forward path (perf review: previously the
    mask/weight-plane construction was redone on every forward call).
    """
    wdw_f, bdw, wpw_f, bpw = params
    c_in = wdw_f.shape[0]
    c_out = wpw_f.shape[0]
    HW = H * W

    pos = jnp.arange(HW)
    hh, ww = pos // W, pos % W
    valid = []
    for dy in range(3):
        for dx in range(3):
            hs, ws = hh + dy - 1, ww + dx - 1
            valid.append((hs >= 0) & (hs < H) & (ws >= 0) & (ws < W))
    valid = jnp.stack(valid).astype(jnp.float32)         # (9, H*W)
    mask = jnp.tile(valid, (1, tb))                      # (9, tb*H*W)

    taps = wdw_f.reshape(c_in, 9)                        # (C_in, 9), k = dy*3+dx
    return (taps, mask, bdw.reshape(c_in, 1),
            wpw_f.astype(jnp.bfloat16),                  # bf16 MXU operand
            bpw.reshape(c_out, 1))


def depthwise_separable_conv(x, prep, *, tb=None):
    """x: (B, C_in, H, W) float32 (NCHW, same as the PyTorch module)."""
    B, C_in, H, W = x.shape
    taps, mask, bdw, wpw, bpw = prep
    C_out = wpw.shape[0]
    HW = H * W

    if tb is None:
        tb = B                      # tiny B: collapse to a single grid step
    assert B % tb == 0, "batch must tile evenly; pick tb | B"
    n_steps = B // tb
    N = tb * HW
    assert mask.shape == (9, N), "prepare_kernel_operands(tb) must match tb"
    if n_steps > 1:
        # Tile boundaries must stay lane-aligned and on whole batch elements.
        assert N % 128 == 0 and C_in % 8 == 0

    # Channel-major, batch folded into lanes: (C_in, B*H*W).  In a real
    # network this layout would be kept between layers; here the transpose is
    # one-off plumbing from the NCHW interface.
    x_cm = x.reshape(B, C_in, HW).transpose(1, 0, 2).reshape(C_in, B * HW)

    kernel = functools.partial(_dwsep_kernel, W=W)
    out_cm = pl.pallas_call(
        kernel,
        out_shape=jax.ShapeDtypeStruct((C_out, B * HW), x.dtype),
        grid=(n_steps,),
        in_specs=[
            pl.BlockSpec((C_in, N), lambda n: (0, n)),
            pl.BlockSpec((C_in, 9), lambda n: (0, 0)),     # constant index:
            pl.BlockSpec((9, N), lambda n: (0, 0)),        #   fetched once
            pl.BlockSpec((C_in, 1), lambda n: (0, 0)),
            pl.BlockSpec((C_out, C_in), lambda n: (0, 0)),
            pl.BlockSpec((C_out, 1), lambda n: (0, 0)),
        ],
        out_specs=pl.BlockSpec((C_out, N), lambda n: (0, n)),
        # Batch tiles are independent -> let v7x's two TensorCores split the
        # grid (no effect on single-TC v5e/v6e).  When B grows, choose tb so
        # each core sees >= 4 grid steps for pipeline steady state.
        compiler_params=pltpu.CompilerParams(
            dimension_semantics=("parallel",)),
    )(x_cm, taps, mask, bdw, wpw, bpw)

    return (out_cm.reshape(C_out, B, HW).transpose(1, 0, 2)
            .reshape(B, C_out, H, W))


def init_params(key, c_in, c_out, dtype=jnp.float32):
    """Deterministic synthetic params matching the PyTorch module shapes,
    with eval-mode BatchNorm folded into the convs."""
    ks = jax.random.split(key, 4)
    eps = 1e-3

    def conv_w(k, shape, fan_in):
        bound = 1.0 / jnp.sqrt(jnp.asarray(fan_in, dtype))
        return jax.random.uniform(k, shape, dtype, -bound, bound)

    # PyTorch layouts: depthwise (C_in, 1, 3, 3) groups=C_in; pointwise (C_out, C_in, 1, 1).
    w_dw = conv_w(ks[0], (c_in, 1, 3, 3), 9)
    w_pw = conv_w(ks[1], (c_out, c_in, 1, 1), c_in)

    def bn(k, n):
        k1, k2, k3, k4 = jax.random.split(k, 4)
        gamma = 1.0 + 0.1 * jax.random.normal(k1, (n,), dtype)
        beta = 0.1 * jax.random.normal(k2, (n,), dtype)
        mean = 0.1 * jax.random.normal(k3, (n,), dtype)
        var = jax.random.uniform(k4, (n,), dtype, 0.5, 1.5)
        scale = gamma / jnp.sqrt(var + eps)
        shift = beta - mean * scale
        return scale, shift

    s1, sh1 = bn(ks[2], c_in)
    s2, sh2 = bn(ks[3], c_out)

    wdw_f = w_dw[:, 0] * s1[:, None, None]       # (C_in, 3, 3)
    bdw = sh1                                    # (C_in,)
    wpw_f = w_pw[:, :, 0, 0] * s2[:, None]       # (C_out, C_in)
    bpw = sh2                                    # (C_out,)
    return wdw_f, bdw, wpw_f, bpw


def reference(x, params, *, mxu_bf16=False):
    """Pure-JAX NCHW reference mirroring the PyTorch forward (eval-mode BN).

    mxu_bf16=True applies the same explicit bf16 operand cast for the 1x1
    matmul that the kernel uses (tight structural check); False is the exact
    f32 semantics of the PyTorch module (looser tolerance for the bf16 cast).
    """
    wdw_f, bdw, wpw_f, bpw = params
    B, C, H, W = x.shape
    xp = jnp.pad(x, ((0, 0), (0, 0), (1, 1), (1, 1)))
    dw = jnp.zeros_like(x)
    for dy in range(3):
        for dx in range(3):
            w_tap = wdw_f[:, dy, dx][None, :, None, None]
            dw = dw + xp[:, :, dy:dy + H, dx:dx + W] * w_tap
    dw = jnp.maximum(dw + bdw[None, :, None, None], 0.0)
    if mxu_bf16:
        pw = jnp.einsum('bchw,kc->bkhw', dw.astype(jnp.bfloat16),
                        wpw_f.astype(jnp.bfloat16),
                        preferred_element_type=jnp.float32)
    else:
        pw = jnp.einsum('bchw,kc->bkhw', dw, wpw_f,
                        precision=jax.lax.Precision.HIGHEST)
    return jnp.maximum(pw + bpw[None, :, None, None], 0.0)


if __name__ == "__main__":
    key = jax.random.PRNGKey(0)
    kx, kp = jax.random.split(key)

    B, C_in, C_out, H, W = 2, 16, 32, 16, 16
    x = jax.random.normal(kx, (B, C_in, H, W), jnp.float32)   # NCHW

    params = init_params(kp, C_in, C_out)
    # One-time weight/mask folding, hoisted out of the forward path.
    prep = prepare_kernel_operands(params, H, W, tb=B)

    fwd = jax.jit(depthwise_separable_conv)
    out = jax.block_until_ready(fwd(x, prep))
    assert out.shape == (B, C_out, H, W)

    # Tight check vs. a reference using the same explicit bf16 MXU operands
    # (structural correctness of rolls / mask / matmul).
    ref_bf16 = reference(x, params, mxu_bf16=True)
    assert jnp.allclose(out, ref_bf16, rtol=5e-3, atol=5e-3), \
        "mismatch vs bf16-operand reference"

    # Loose check vs. the exact f32 PyTorch semantics; tolerance documents the
    # explicit bf16 MXU operand choice for the pointwise matmul.
    ref_f32 = reference(x, params)
    assert jnp.allclose(out, ref_f32, rtol=2e-2, atol=2e-2), \
        "mismatch vs f32 reference"

    print("KERNEL_OK")
</pallas_src>

<mosaic_0001>
module attributes {stable_mosaic.version = 11 : i64} {
  func.func @_dwsep_kernel(%arg0: i32, %arg1: memref<16x512xf32, #tpu.memory_space<vmem>>, %arg2: memref<16x9xf32, #tpu.memory_space<vmem>>, %arg3: memref<9x512xf32, #tpu.memory_space<vmem>>, %arg4: memref<16x1xf32, #tpu.memory_space<vmem>>, %arg5: memref<32x16xbf16, #tpu.memory_space<vmem>>, %arg6: memref<32x1xf32, #tpu.memory_space<vmem>>, %arg7: memref<32x512xf32, #tpu.memory_space<vmem>>) attributes {dimension_semantics = [#tpu.dimension_semantics<parallel>], iteration_bounds = array<i64: 1>, scalar_prefetch = 0 : i64, scratch_operands = 0 : i64, tpu.core_type = #tpu.core_type<tc>, window_params = [{transform_indices = @transform_0, window_bounds = array<i64: 16, 512>}, {pipeline_mode = #tpu.pipeline_mode<synchronous>, transform_indices = @transform_1, window_bounds = array<i64: 16, 9>}, {pipeline_mode = #tpu.pipeline_mode<synchronous>, transform_indices = @transform_2, window_bounds = array<i64: 9, 512>}, {pipeline_mode = #tpu.pipeline_mode<synchronous>, transform_indices = @transform_3, window_bounds = array<i64: 16, 1>}, {pipeline_mode = #tpu.pipeline_mode<synchronous>, transform_indices = @transform_4, window_bounds = array<i64: 32, 16>}, {pipeline_mode = #tpu.pipeline_mode<synchronous>, transform_indices = @transform_5, window_bounds = array<i64: 32, 1>}, {transform_indices = @transform_6, window_bounds = array<i64: 32, 512>}]} {
    %c0 = arith.constant 0 : index
    %c0_0 = arith.constant 0 : index
    %0 = vector.load %arg1[%c0, %c0_0] : memref<16x512xf32, #tpu.memory_space<vmem>>, vector<16x512xf32>
    %c0_1 = arith.constant 0 : index
    %c0_2 = arith.constant 0 : index
    %1 = vector.load %arg2[%c0_1, %c0_2] : memref<16x9xf32, #tpu.memory_space<vmem>>, vector<16x9xf32>
    %c0_3 = arith.constant 0 : index
    %c0_4 = arith.constant 0 : index
    %2 = vector.load %arg3[%c0_3, %c0_4] : memref<9x512xf32, #tpu.memory_space<vmem>>, vector<9x512xf32>
    %cst = arith.constant 0.000000e+00 : f32
    %3 = vector.broadcast %cst : f32 to vector<16x512xf32>
    %c17_i32 = arith.constant 17 : i32
    %4 = tpu.dynamic_rotate %0 by %c17_i32 dim 1 : vector<16x512xf32>, i32 -> vector<16x512xf32>
    %5 = vector.extract_strided_slice %2 {offsets = [0, 0], sizes = [1, 512], strides = [1, 1]} : vector<9x512xf32> to vector<1x512xf32>
    %6 = vector.broadcast %5 : vector<1x512xf32> to vector<16x512xf32>
    %7 = arith.mulf %4, %6 : vector<16x512xf32>
    %8 = vector.extract_strided_slice %1 {offsets = [0, 0], sizes = [16, 1], strides = [1, 1]} : vector<16x9xf32> to vector<16x1xf32>
    %9 = vector.broadcast %8 : vector<16x1xf32> to vector<16x512xf32>
    %10 = arith.mulf %7, %9 : vector<16x512xf32>
    %11 = arith.addf %3, %10 : vector<16x512xf32>
    %c16_i32 = arith.constant 16 : i32
    %12 = tpu.dynamic_rotate %0 by %c16_i32 dim 1 : vector<16x512xf32>, i32 -> vector<16x512xf32>
    %13 = vector.extract_strided_slice %2 {offsets = [1, 0], sizes = [1, 512], strides = [1, 1]} : vector<9x512xf32> to vector<1x512xf32>
    %14 = vector.broadcast %13 : vector<1x512xf32> to vector<16x512xf32>
    %15 = arith.mulf %12, %14 : vector<16x512xf32>
    %16 = vector.extract_strided_slice %1 {offsets = [0, 1], sizes = [16, 1], strides = [1, 1]} : vector<16x9xf32> to vector<16x1xf32>
    %17 = vector.broadcast %16 : vector<16x1xf32> to vector<16x512xf32>
    %18 = arith.mulf %15, %17 : vector<16x512xf32>
    %19 = arith.addf %11, %18 : vector<16x512xf32>
    %c15_i32 = arith.constant 15 : i32
    %20 = tpu.dynamic_rotate %0 by %c15_i32 dim 1 : vector<16x512xf32>, i32 -> vector<16x512xf32>
    %21 = vector.extract_strided_slice %2 {offsets = [2, 0], sizes = [1, 512], strides = [1, 1]} : vector<9x512xf32> to vector<1x512xf32>
    %22 = vector.broadcast %21 : vector<1x512xf32> to vector<16x512xf32>
    %23 = arith.mulf %20, %22 : vector<16x512xf32>
    %24 = vector.extract_strided_slice %1 {offsets = [0, 2], sizes = [16, 1], strides = [1, 1]} : vector<16x9xf32> to vector<16x1xf32>
    %25 = vector.broadcast %24 : vector<16x1xf32> to vector<16x512xf32>
    %26 = arith.mulf %23, %25 : vector<16x512xf32>
    %27 = arith.addf %19, %26 : vector<16x512xf32>
    %c1_i32 = arith.constant 1 : i32
    %28 = tpu.dynamic_rotate %0 by %c1_i32 dim 1 : vector<16x512xf32>, i32 -> vector<16x512xf32>
    %29 = vector.extract_strided_slice %2 {offsets = [3, 0], sizes = [1, 512], strides = [1, 1]} : vector<9x512xf32> to vector<1x512xf32>
    %30 = vector.broadcast %29 : vector<1x512xf32> to vector<16x512xf32>
    %31 = arith.mulf %28, %30 : vector<16x512xf32>
    %32 = vector.extract_strided_slice %1 {offsets = [0, 3], sizes = [16, 1], strides = [1, 1]} : vector<16x9xf32> to vector<16x1xf32>
    %33 = vector.broadcast %32 : vector<16x1xf32> to vector<16x512xf32>
    %34 = arith.mulf %31, %33 : vector<16x512xf32>
    %35 = arith.addf %27, %34 : vector<16x512xf32>
    %36 = vector.extract_strided_slice %1 {offsets = [0, 4], sizes = [16, 1], strides = [1, 1]} : vector<16x9xf32> to vector<16x1xf32>
    %37 = vector.broadcast %36 : vector<16x1xf32> to vector<16x512xf32>
    %38 = arith.mulf %0, %37 : vector<16x512xf32>
    %39 = arith.addf %35, %38 : vector<16x512xf32>
    %c511_i32 = arith.constant 511 : i32
    %40 = tpu.dynamic_rotate %0 by %c511_i32 dim 1 : vector<16x512xf32>, i32 -> vector<16x512xf32>
    %41 = vector.extract_strided_slice %2 {offsets = [5, 0], sizes = [1, 512], strides = [1, 1]} : vector<9x512xf32> to vector<1x512xf32>
    %42 = vector.broadcast %41 : vector<1x512xf32> to vector<16x512xf32>
    %43 = arith.mulf %40, %42 : vector<16x512xf32>
    %44 = vector.extract_strided_slice %1 {offsets = [0, 5], sizes = [16, 1], strides = [1, 1]} : vector<16x9xf32> to vector<16x1xf32>
    %45 = vector.broadcast %44 : vector<16x1xf32> to vector<16x512xf32>
    %46 = arith.mulf %43, %45 : vector<16x512xf32>
    %47 = arith.addf %39, %46 : vector<16x512xf32>
    %c497_i32 = arith.constant 497 : i32
    %48 = tpu.dynamic_rotate %0 by %c497_i32 dim 1 : vector<16x512xf32>, i32 -> vector<16x512xf32>
    %49 = vector.extract_strided_slice %2 {offsets = [6, 0], sizes = [1, 512], strides = [1, 1]} : vector<9x512xf32> to vector<1x512xf32>
    %50 = vector.broadcast %49 : vector<1x512xf32> to vector<16x512xf32>
    %51 = arith.mulf %48, %50 : vector<16x512xf32>
    %52 = vector.extract_strided_slice %1 {offsets = [0, 6], sizes = [16, 1], strides = [1, 1]} : vector<16x9xf32> to vector<16x1xf32>
    %53 = vector.broadcast %52 : vector<16x1xf32> to vector<16x512xf32>
    %54 = arith.mulf %51, %53 : vector<16x512xf32>
    %55 = arith.addf %47, %54 : vector<16x512xf32>
    %c496_i32 = arith.constant 496 : i32
    %56 = tpu.dynamic_rotate %0 by %c496_i32 dim 1 : vector<16x512xf32>, i32 -> vector<16x512xf32>
    %57 = vector.extract_strided_slice %2 {offsets = [7, 0], sizes = [1, 512], strides = [1, 1]} : vector<9x512xf32> to vector<1x512xf32>
    %58 = vector.broadcast %57 : vector<1x512xf32> to vector<16x512xf32>
    %59 = arith.mulf %56, %58 : vector<16x512xf32>
    %60 = vector.extract_strided_slice %1 {offsets = [0, 7], sizes = [16, 1], strides = [1, 1]} : vector<16x9xf32> to vector<16x1xf32>
    %61 = vector.broadcast %60 : vector<16x1xf32> to vector<16x512xf32>
    %62 = arith.mulf %59, %61 : vector<16x512xf32>
    %63 = arith.addf %55, %62 : vector<16x512xf32>
    %c495_i32 = arith.constant 495 : i32
    %64 = tpu.dynamic_rotate %0 by %c495_i32 dim 1 : vector<16x512xf32>, i32 -> vector<16x512xf32>
    %65 = vector.extract_strided_slice %2 {offsets = [8, 0], sizes = [1, 512], strides = [1, 1]} : vector<9x512xf32> to vector<1x512xf32>
    %66 = vector.broadcast %65 : vector<1x512xf32> to vector<16x512xf32>
    %67 = arith.mulf %64, %66 : vector<16x512xf32>
    %68 = vector.extract_strided_slice %1 {offsets = [0, 8], sizes = [16, 1], strides = [1, 1]} : vector<16x9xf32> to vector<16x1xf32>
    %69 = vector.broadcast %68 : vector<16x1xf32> to vector<16x512xf32>
    %70 = arith.mulf %67, %69 : vector<16x512xf32>
    %71 = arith.addf %63, %70 : vector<16x512xf32>
    %c0_5 = arith.constant 0 : index
    %c0_6 = arith.constant 0 : index
    %72 = vector.load %arg4[%c0_5, %c0_6] : memref<16x1xf32, #tpu.memory_space<vmem>>, vector<16x1xf32>
    %73 = vector.broadcast %72 : vector<16x1xf32> to vector<16x512xf32>
    %74 = arith.addf %71, %73 : vector<16x512xf32>
    %cst_7 = arith.constant 0.000000e+00 : f32
    %75 = vector.broadcast %cst_7 : f32 to vector<16x512xf32>
    %76 = arith.maximumf %74, %75 : vector<16x512xf32>
    %c0_8 = arith.constant 0 : index
    %c0_9 = arith.constant 0 : index
    %77 = vector.load %arg5[%c0_8, %c0_9] : memref<32x16xbf16, #tpu.memory_space<vmem>>, vector<32x16xbf16>
    %78 = arith.truncf %76 : vector<16x512xf32> to vector<16x512xbf16>
    %cst_10 = arith.constant dense<0.000000e+00> : vector<32x512xf32>
    %79 = tpu.matmul %77, %78, %cst_10 {dimension_numbers = #tpu.dot_dimension_numbers<[1], [0], [0], [1], [0, 0, 1, 1], [], []>} : vector<32x16xbf16>, vector<16x512xbf16>, vector<32x512xf32> -> vector<32x512xf32>
    %c0_11 = arith.constant 0 : index
    %c0_12 = arith.constant 0 : index
    %80 = vector.load %arg6[%c0_11, %c0_12] : memref<32x1xf32, #tpu.memory_space<vmem>>, vector<32x1xf32>
    %81 = vector.broadcast %80 : vector<32x1xf32> to vector<32x512xf32>
    %82 = arith.addf %79, %81 : vector<32x512xf32>
    %cst_13 = arith.constant 0.000000e+00 : f32
    %83 = vector.broadcast %cst_13 : f32 to vector<32x512xf32>
    %84 = arith.maximumf %82, %83 : vector<32x512xf32>
    %c0_14 = arith.constant 0 : index
    %c0_15 = arith.constant 0 : index
    %85 = vector.load %arg7[%c0_14, %c0_15] : memref<32x512xf32, #tpu.memory_space<vmem>>, vector<32x512xf32>
    tpu.vector_store %arg7[%c0_14, %c0_15], %84 {strides = array<i32>} : memref<32x512xf32, #tpu.memory_space<vmem>>, vector<32x512xf32>,
    return
  }
  func.func @transform_0(%arg0: i32) -> (i32, i32) {
    %c0_i32 = arith.constant 0 : i32
    %c0_i32_0 = arith.constant 0 : i32
    return %c0_i32, %arg0 : i32, i32
  }
  func.func @transform_1(%arg0: i32) -> (i32, i32) {
    %c0_i32 = arith.constant 0 : i32
    %c0_i32_0 = arith.constant 0 : i32
    %c0_i32_1 = arith.constant 0 : i32
    return %c0_i32, %c0_i32_0 : i32, i32
  }
  func.func @transform_2(%arg0: i32) -> (i32, i32) {
    %c0_i32 = arith.constant 0 : i32
    %c0_i32_0 = arith.constant 0 : i32
    %c0_i32_1 = arith.constant 0 : i32
    return %c0_i32, %c0_i32_0 : i32, i32
  }
  func.func @transform_3(%arg0: i32) -> (i32, i32) {
    %c0_i32 = arith.constant 0 : i32
    %c0_i32_0 = arith.constant 0 : i32
    %c0_i32_1 = arith.constant 0 : i32
    return %c0_i32, %c0_i32_0 : i32, i32
  }
  func.func @transform_4(%arg0: i32) -> (i32, i32) {
    %c0_i32 = arith.constant 0 : i32
    %c0_i32_0 = arith.constant 0 : i32
    %c0_i32_1 = arith.constant 0 : i32
    return %c0_i32, %c0_i32_0 : i32, i32
  }
  func.func @transform_5(%arg0: i32) -> (i32, i32) {
    %c0_i32 = arith.constant 0 : i32
    %c0_i32_0 = arith.constant 0 : i32
    %c0_i32_1 = arith.constant 0 : i32
    return %c0_i32, %c0_i32_0 : i32, i32
  }
  func.func @transform_6(%arg0: i32) -> (i32, i32) {
    %c0_i32 = arith.constant 0 : i32
    %c0_i32_0 = arith.constant 0 : i32
    return %c0_i32, %arg0 : i32, i32
  }
}

</mosaic_0001>

<bundles_post_ra>
// kernel: depthwise_separable_conv.1
= control target key start
LH: loop header
LB: loop body
LE: loop exit
PB: predicated region body
PF: predicated region fallthrough
CT: control target
= control target key end

     0   :  { %v918_v0 = vmov 2   ;;  %v919_v1 = vmov 1   ;;  %v1697_v5 = vmov 0   ;;  %s921_s27 = smov 17   ;;  %v922_v7 = vmov 3   ;;  %s923_s15 = smov 16   ;;  %s1690_s1 = inlined_call_operand.vmem [shape: f32[16,9], index: 1, kind: input, shape index: {}]   ;;  %s1691_s0 = inlined_call_operand.vmem [shape: f32[16,512], index: 0, kind: input, shape index: {}]   ;;  %s1692_s2 = inlined_call_operand.vmem [shape: f32[9,512], index: 2, kind: input, shape index: {}]   ;;  %s1693_s3 = inlined_call_operand.vmem [shape: f32[16,1], index: 3, kind: input, shape index: {}]   ;;  %s1694_s5 = inlined_call_operand.vmem [shape: f32[32,1], index: 5, kind: input, shape index: {}]   ;;  %s1695_s4 = inlined_call_operand.vmem [shape: bf16[32,16], index: 4, kind: input, shape index: {}]   ;;  %s1696_s6 = inlined_call_operand.vmem [shape: f32[32,512], index: 6, kind: output, shape index: {}]  }
   0x1   :  { %901 = vset.pattern.permute.xlu0 %v918_v0  ;;  %900 = vset.pattern.permute.xlu1 %v919_v1  ;;  %v973_v2 = vld [vmem:[%s1690_s1] sm:$0xff]  ;;  %v980_v3 = vld [vmem:[%s1690_s1 + $0x8] sm:$0xff]  ;;  %v1001_v8 = vld [vmem:[%s1691_s0 + $0x30] sm:$0xff]  ;;  %s924_s18 = smov 15   ;;  %v925_v14 = vmov 4   ;;  %v927_v15 = vmov 5   ;;  %v58_v21 = vlaneseq }
   0x2   :  { %242 = vperm.xlu0 %901, %v973_v2   ;;  %169 = vperm.xlu1 %900, %v973_v2   ;;  %v985_v4 = vld [vmem:[%s1691_s0 + $0x20] sm:$0xff]  ;;  %v994_v6 = vld [vmem:[%s1691_s0 + $0x28] sm:$0xff]  ;;  %v1013_v10 = vld [vmem:[%s1691_s0 + $0x38] sm:$0xff]  ;;  %s928_s19 = smov 127   ;;  %v929_v16 = vmov 7   ;;  %v930_v17 = vmov 6  }
   0x3   :  { %763 = vmatprep.mubr.bf16.mxu0 %v1697_v5  ;;  %816 = vmatprep.mubr.bf16.mxu1 %v1697_v5  ;;  %v1006_v9 = vld [vmem:[%s1691_s0] sm:$0xff]  ;;  %v1018_v11 = vld [vmem:[%s1691_s0 + $0x8] sm:$0xff]  ;;  %v1025_v12 = vld [vmem:[%s1691_s0 + $0x10] sm:$0xff]  ;;  %s931_s20 = smov 113   ;;  %v932_v18 = vmov 8   ;;  %s933_s21 = smov 112  }
   0x4   :  { %v1032_v13 = vld [vmem:[%s1691_s0 + $0x18] sm:$0xff]  ;;  %s926_s0 = smov 1   ;;  %v1100_v22 = vand.u32 127, %v58_v21  ;;  %s934_s22 = smov 111   ;;  %v1128_v31 = vshrl.u32 %v58_v21, 7  ;;  %v1151_v39 = vld [vmem:[%s1692_s2 + $0x8] sm:$0xff] }
   0x5   :  { %1706 = vst [vmem:[#allocation3_spill] sm:$0xff] %v1151_v39  ;;  %v654_v43 = vld [vmem:[%s1693_s3] sm:$0xff]  ;;  %v1169_v45 = vld [vmem:[%s1692_s2 + $0x10] sm:$0xff]  ;;  %v691_v52 = vld [vmem:[%s1694_s5 + $0x8] sm:$0xff]  ;;  %vm724_vm8 = vcmask 130048  }
   0x6   :  { %173 = vperm.xlu1 %900, %v980_v3   ;;  %44 = vrot.lane.b32.xlu0 %v985_v4, %s921_s27  ;;  %vm60_vm0 = vcmp.lt.s32.totalorder %v1100_v22, 17  ;;  %1705 = vst [vmem:[#allocation2_spill] sm:$0xff] %v1128_v31  ;;  %v146_v37 = vsub.s32 1, %v1128_v31  ;;  %vm135_vm1 = vcmp.lt.s32.totalorder %v1100_v22, 16  ;;  %1707 = vst [vmem:[#allocation4_spill] sm:$0xff] %v1169_v45  ;;  %v1193_v55 = vld [vmem:[%s1692_s2] sm:$0xff] }
   0x7   :  { %904 = vset.pattern.permute.xlu0 %v922_v7  ;;  %1709 = vst [vmem:[#allocation6_spill] sm:$0xff] %v1193_v55  ;;  %v1198_v56 = vld [vmem:[%s1692_s2 + $0x18] sm:$0xff]  ;;  %vm208_vm2 = vcmp.lt.s32.totalorder %v1100_v22, 15  ;;  %vm281_vm3 = vcmp.lt.s32.totalorder %v1100_v22, 1  ;;  %vm378_vm4 = vcmp.lt.s32.totalorder %v1100_v22, 127  ;;  %vm451_vm5 = vcmp.lt.s32.totalorder %v1100_v22, 113 }
   0x8   :  { %v151_v42 = vrot.slane %v1151_v39, %v146_v37  ;;  %v155_v51 = vrot.slane %v1169_v45, %v146_v37  ;;  %v147_v60 = vrot.slane %v1193_v55, %v146_v37  ;;  %v159_v61 = vrot.slane %v1198_v56, %v146_v37  ;;  %v693_v62 = vld [vmem:[%s1694_s5 + $0x18] sm:$0xff] }
   0x9   :  { %vm524_vm6 = vcmp.lt.s32.totalorder %v1100_v22, 112  ;;  %vm597_vm7 = vcmp.lt.s32.totalorder %v1100_v22, 111 }
   0xa   :  { %902 = vset.pattern.permute.xlu1 %v918_v0  ;;  %48 = vrot.lane.b32.xlu0 %v994_v6, %s921_s27 }
   0xb   :  { %246 = vperm.xlu1 %902, %v980_v3  }
   0xe   :  { %52 = vrot.lane.b32.xlu0 %v1001_v8, %s921_s27 }
   0xf   :  { %42 = vrot.lane.b32.xlu1 %v1006_v9, %s921_s27 }
  0x10   :  { %903 = vset.pattern.permute.xlu1 %v922_v7 }
  0x12   :  { %56 = vrot.lane.b32.xlu0 %v1013_v10, %s921_s27 }
  0x13   :  { %46 = vrot.lane.b32.xlu1 %v1018_v11, %s921_s27 }
  0x16   :  { %121 = vrot.lane.b32.xlu0 %v985_v4, %s923_s15 }
  0x17   :  { %50 = vrot.lane.b32.xlu1 %v1025_v12, %s921_s27 }
  0x1a   :  { %125 = vrot.lane.b32.xlu0 %v994_v6, %s923_s15 }
  0x1b   :  { %54 = vrot.lane.b32.xlu1 %v1032_v13, %s921_s27 }
  0x1e   :  { %129 = vrot.lane.b32.xlu0 %v1001_v8, %s923_s15 }
  0x1f   :  { %119 = vrot.lane.b32.xlu1 %v1006_v9, %s923_s15 }
  0x22   :  { %133 = vrot.lane.b32.xlu0 %v1013_v10, %s923_s15 }
  0x23   :  { %123 = vrot.lane.b32.xlu1 %v1018_v11, %s923_s15 }
  0x26   :  { %319 = vperm.xlu0 %904, %v980_v3  }
  0x27   :  { %127 = vrot.lane.b32.xlu1 %v1025_v12, %s923_s15 }
  0x2a   :  { %196 = vrot.lane.b32.xlu0 %v1018_v11, %s924_s18 }
  0x2b   :  { %131 = vrot.lane.b32.xlu1 %v1032_v13, %s923_s15  ;;  %905 = vset.pattern.permute.xlu0 %v925_v14 }
  0x2e   :  { %200 = vrot.lane.b32.xlu0 %v1025_v12, %s924_s18 }
  0x2f   :  { %315 = vperm.xlu1 %903, %v973_v2  }
  0x32   :  { %204 = vrot.lane.b32.xlu0 %v1032_v13, %s924_s18 }
  0x33   :  { %192 = vrot.lane.b32.xlu1 %v1006_v9, %s924_s18 }
  0x34   :  { %906 = vset.pattern.permute.xlu1 %v925_v14 }
  0x36   :  { %339 = vperm.xlu0 %905, %v973_v2  }
  0x37   :  { %194 = vrot.lane.b32.xlu1 %v985_v4, %s924_s18 }
  0x3a   :  { %267 = vrot.lane.b32.xlu0 %v985_v4, %s926_s0 }
  0x3b   :  { %198 = vrot.lane.b32.xlu1 %v994_v6, %s924_s18  ;;  %908 = vset.pattern.permute.xlu0 %v927_v15 }
  0x3e   :  { %271 = vrot.lane.b32.xlu0 %v994_v6, %s926_s0 }
  0x3f   :  { %202 = vrot.lane.b32.xlu1 %v1001_v8, %s924_s18 }
  0x42   :  { %275 = vrot.lane.b32.xlu0 %v1001_v8, %s926_s0 }
  0x43   :  { %206 = vrot.lane.b32.xlu1 %v1013_v10, %s924_s18 }
  0x46   :  { %279 = vrot.lane.b32.xlu0 %v1013_v10, %s926_s0 }
  0x47   :  { %343 = vperm.xlu1 %906, %v980_v3  }
  0x4a   :  { %416 = vperm.xlu0 %908, %v980_v3  }
  0x4b   :  { %265 = vrot.lane.b32.xlu1 %v1006_v9, %s926_s0 }
  0x4c   :  { %907 = vset.pattern.permute.xlu1 %v927_v15 }
  0x4e   :  { %362 = vrot.lane.b32.xlu0 %v1006_v9, %s928_s19 }
  0x4f   :  { %269 = vrot.lane.b32.xlu1 %v1018_v11, %s926_s0  ;;  %910 = vset.pattern.permute.xlu0 %v929_v16 }
  0x52   :  { %366 = vrot.lane.b32.xlu0 %v1018_v11, %s928_s19 }
  0x53   :  { %273 = vrot.lane.b32.xlu1 %v1025_v12, %s926_s0 }
  0x56   :  { %370 = vrot.lane.b32.xlu0 %v1025_v12, %s928_s19 }
  0x57   :  { %277 = vrot.lane.b32.xlu1 %v1032_v13, %s926_s0 }
  0x5a   :  { %374 = vrot.lane.b32.xlu0 %v1032_v13, %s928_s19 }
  0x5b   :  { %412 = vperm.xlu1 %907, %v973_v2  }
  0x5e   :  { %558 = vperm.xlu0 %910, %v973_v2  }
  0x5f   :  { %909 = vset.pattern.permute.xlu1 %v930_v17 }
  0x60   :  { %485 = vperm.xlu1 %909, %v973_v2  }
  0x62   :  { %437 = vrot.lane.b32.xlu0 %v985_v4, %s931_s20 }
  0x63   :  { %913 = vset.pattern.permute.xlu0 %v932_v18 }
  0x64   :  { %489 = vperm.xlu1 %909, %v980_v3  }
  0x66   :  { %441 = vrot.lane.b32.xlu0 %v994_v6, %s931_s20 }
  0x68   :  { %364 = vrot.lane.b32.xlu1 %v985_v4, %s928_s19 }
  0x69   :  { %911 = vset.pattern.permute.xlu1 %v929_v16 }
  0x6a   :  { %445 = vrot.lane.b32.xlu0 %v1001_v8, %s931_s20 }
  0x6c   :  { %368 = vrot.lane.b32.xlu1 %v994_v6, %s928_s19 }
  0x6e   :  { %449 = vrot.lane.b32.xlu0 %v1013_v10, %s931_s20 }
  0x70   :  { %372 = vrot.lane.b32.xlu1 %v1001_v8, %s928_s19 }
  0x72   :  { %635 = vperm.xlu0 %913, %v980_v3  }
  0x74   :  { %376 = vrot.lane.b32.xlu1 %v1013_v10, %s928_s19 }
  0x76   :  { %914 = vset.pattern.permute.xlu0 %v1697_v5 }
  0x77   :  { %95 = vperm.xlu0 %914, %v973_v2  }
  0x78   :  { %562 = vperm.xlu1 %911, %v980_v3  }
  0x7b   :  { %100 = vperm.xlu0 %914, %v980_v3  }
  0x7c   :  { %435 = vrot.lane.b32.xlu1 %v1006_v9, %s931_s20 }
  0x7d   :  { %912 = vset.pattern.permute.xlu1 %v932_v18 }
  0x7f   :  { %512 = vrot.lane.b32.xlu0 %v1018_v11, %s933_s21 }
  0x80   :  { %439 = vrot.lane.b32.xlu1 %v1018_v11, %s931_s20 }
  0x81   :  { %v1094_v19 = vpop.permute.xlu0 %242  ;;  %v1096_v20 = vpop.permute.xlu1 %169 }
  0x83   :  { %516 = vrot.lane.b32.xlu0 %v1025_v12, %s933_s21 }
  0x84   :  { %443 = vrot.lane.b32.xlu1 %v1025_v12, %s931_s20 }
  0x85   :  { %v1104_v23 = vpop.permute.xlu1 %173  ;;  %v45_v24 = vpop.permute.xlu0 %44 }
  0x87   :  { %520 = vrot.lane.b32.xlu0 %v1032_v13, %s933_s21 }
  0x88   :  { %447 = vrot.lane.b32.xlu1 %v1032_v13, %s931_s20 }
  0x89   :  { %v49_v25 = vpop.permute.xlu0 %48 }
  0x8a   :  { %v1113_v26 = vsel %vm60_vm0, %v45_v24, %v49_v25  ;;  %v1115_v27 = vpop.permute.xlu1 %246 }
  0x8b   :  { %581 = vrot.lane.b32.xlu0 %v1006_v9, %s934_s22 }
  0x8c   :  { %631 = vperm.xlu1 %912, %v973_v2  }
  0x8d   :  { %v53_v28 = vpop.permute.xlu0 %52 }
  0x8e   :  { %v1122_v29 = vsel %vm60_vm0, %v49_v25, %v53_v28  ;;  %v43_v30 = vpop.permute.xlu1 %42 }
  0x8f   :  { %585 = vrot.lane.b32.xlu0 %v1018_v11, %s934_s22 }
  0x90   :  { %508 = vrot.lane.b32.xlu1 %v1006_v9, %s933_s21 }
  0x91   :  { %v57_v32 = vpop.permute.xlu0 %56  ;;  %915 = vset.pattern.permute.xlu1 %v1697_v5 }
  0x92   :  { %v1133_v33 = vsel %vm60_vm0, %v53_v28, %v57_v32  ;;  %v1137_v34 = vsel %vm60_vm0, %v57_v32, %v45_v24  ;;  %v47_v35 = vpop.permute.xlu1 %46 }
  0x93   :  { %v1141_v36 = vsel %vm60_vm0, %v43_v30, %v47_v35  ;;  %589 = vrot.lane.b32.xlu0 %v1025_v12, %s934_s22 }
  0x94   :  { %510 = vrot.lane.b32.xlu1 %v985_v4, %s933_s21 }
  0x95   :  { %v122_v38 = vpop.permute.xlu0 %121 }
  0x96   :  { %v51_v40 = vpop.permute.xlu1 %50 }
  0x97   :  { %v1155_v41 = vsel %vm60_vm0, %v47_v35, %v51_v40  ;;  %593 = vrot.lane.b32.xlu0 %v1032_v13, %s934_s22 }
  0x98   :  { %514 = vrot.lane.b32.xlu1 %v994_v6, %s933_s21 }
  0x99   :  { %v126_v44 = vpop.permute.xlu0 %125 }
  0x9a   :  { %v141_v46 = vsel %vm135_vm1, %v122_v38, %v126_v44  ;;  %v55_v47 = vpop.permute.xlu1 %54 }
  0x9b   :  { %v165_v48 = vmul.f32 %v151_v42, %v141_v46  ;;  %v1175_v49 = vsel %vm60_vm0, %v51_v40, %v55_v47  ;;  %v1179_v50 = vsel %vm60_vm0, %v55_v47, %v43_v30  ;;  %658 = vperm.xlu0 %914, %v654_v43   ;;  %v219_v30 = vsub.s32 2, %v1128_v31 }
  0x9c   :  { %518 = vrot.lane.b32.xlu1 %v1001_v8, %s933_s21 }
  0x9d   :  { %v1188_v53 = vmul.f32 %v1104_v23, %v165_v48  ;;  %v130_v54 = vpop.permute.xlu0 %129 }
  0x9e   :  { %v139_v57 = vsel %vm135_vm1, %v126_v44, %v130_v54  ;;  %v120_v58 = vpop.permute.xlu1 %119 }
  0x9f   :  { %1708 = vst [vmem:[#allocation5_spill] sm:$0xff] %v1188_v53  ;;  %v166_v59 = vmul.f32 %v155_v51, %v139_v57  ;;  %701 = vperm.xlu0 %914, %v691_v52   ;;  %v232_v57 = vrot.slane %v1198_v56, %v219_v30 }
  0xa0   :  { %522 = vrot.lane.b32.xlu1 %v1013_v10, %s933_s21 }
  0xa1   :  { %v1210_v63 = vmul.f32 %v1104_v23, %v166_v59  ;;  %v134_v0 = vpop.permute.xlu0 %133  ;;  %v224_v59 = vrot.slane %v1151_v39, %v219_v30 }
  0xa2   :  { %v137_v1 = vsel %vm135_vm1, %v130_v54, %v134_v0  ;;  %v143_v2 = vsel %vm135_vm1, %v134_v0, %v122_v38  ;;  %v124_v3 = vpop.permute.xlu1 %123 }
  0xa3   :  { %1710 = vst [vmem:[#allocation7_spill] sm:$0xff] %v1210_v63  ;;  %v164_v7 = vmul.f32 %v147_v60, %v143_v2  ;;  %v167_v14 = vmul.f32 %v159_v61, %v137_v1  ;;  %v140_v15 = vsel %vm135_vm1, %v120_v58, %v124_v3  ;;  %711 = vperm.xlu0 %914, %v693_v62  }
  0xa4   :  { %v161_v16 = vmul.f32 %v151_v42, %v140_v15  ;;  %583 = vrot.lane.b32.xlu1 %v985_v4, %s934_s22  ;;  %v228_v42 = vrot.slane %v1169_v45, %v219_v30 }
  0xa5   :  { %v1221_v17 = vmul.f32 %v1104_v23, %v164_v7  ;;  %v1224_v18 = vmul.f32 %v1104_v23, %v167_v14  ;;  %v1226_v21 = vpop.permute.xlu0 %319 }
  0xa6   :  { %v1229_v24 = vmul.f32 %v1096_v20, %v161_v16  ;;  %v128_v25 = vpop.permute.xlu1 %127 }
  0xa7   :  { %1711 = vst [vmem:[#allocation8_spill] sm:$0xff] %v1224_v18  ;;  %v138_v28 = vsel %vm135_vm1, %v124_v3, %v128_v25 }
  0xa8   :  { %v162_v32 = vmul.f32 %v155_v51, %v138_v28  ;;  %587 = vrot.lane.b32.xlu1 %v994_v6, %s934_s22 }
  0xa9   :  { %v197_v35 = vpop.permute.xlu0 %196 }
  0xaa   :  { %v1237_v37 = vmul.f32 %v1096_v20, %v162_v32  ;;  %v132_v23 = vpop.permute.xlu1 %131 }
  0xab   :  { %v136_v38 = vsel %vm135_vm1, %v128_v25, %v132_v23  ;;  %v142_v40 = vsel %vm135_vm1, %v132_v23, %v120_v58  ;;  %v220_v58 = vrot.slane %v1193_v55, %v219_v30  ;;  %v690_v25 = vld [vmem:[%s1694_s5] sm:$0xff] }
  0xac   :  { %v160_v43 = vmul.f32 %v147_v60, %v142_v40  ;;  %v163_v44 = vmul.f32 %v159_v61, %v136_v38  ;;  %591 = vrot.lane.b32.xlu1 %v1001_v8, %s934_s22  ;;  %v655_v61 = vld [vmem:[%s1693_s3 + $0x8] sm:$0xff]  ;;  %v692_v38 = vld [vmem:[%s1694_s5 + $0x10] sm:$0xff] }
  0xad   :  { %v201_v46 = vpop.permute.xlu0 %200 }
  0xae   :  { %v1248_v47 = vmul.f32 %v1096_v20, %v160_v43  ;;  %v1251_v48 = vmul.f32 %v1096_v20, %v163_v44  ;;  %v211_v51 = vsel %vm208_vm2, %v197_v35, %v201_v46  ;;  %v1255_v52 = vpop.permute.xlu1 %315 }
  0xaf   :  { %v235_v54 = vmul.f32 %v228_v42, %v211_v51 }
  0xb0   :  { %595 = vrot.lane.b32.xlu1 %v1013_v10, %s934_s22 }
  0xb1   :  { %v1263_v60 = vmul.f32 %v1094_v19, %v235_v54  ;;  %v205_v20 = vpop.permute.xlu0 %204 }
  0xb2   :  { %v209_v62 = vsel %vm208_vm2, %v201_v46, %v205_v20  ;;  %v193_v0 = vpop.permute.xlu1 %192 }
  0xb3   :  { %v236_v1 = vmul.f32 %v232_v57, %v209_v62  ;;  %v213_v2 = vsel %vm208_vm2, %v193_v0, %v197_v35  ;;  %v215_v3 = vsel %vm208_vm2, %v205_v20, %v193_v0  ;;  %v292_v35 = vsub.s32 3, %v1128_v31 }
  0xb4   :  { %v233_v7 = vmul.f32 %v220_v58, %v215_v3  ;;  %v234_v14 = vmul.f32 %v224_v59, %v213_v2  ;;  %663 = vperm.xlu1 %915, %v655_v61  }
  0xb5   :  { %v1275_v15 = vmul.f32 %v1094_v19, %v236_v1  ;;  %v1277_v16 = vpop.permute.xlu0 %339  ;;  %v297_v44 = vrot.slane %v1151_v39, %v292_v35  ;;  %v301_v0 = vrot.slane %v1169_v45, %v292_v35 }
  0xb6   :  { %v1283_v28 = vmul.f32 %v1094_v19, %v233_v7  ;;  %v1286_v30 = vmul.f32 %v1094_v19, %v234_v14  ;;  %v195_v32 = vpop.permute.xlu1 %194 }
  0xb8   :  { %696 = vperm.xlu1 %915, %v690_v25   ;;  %v293_v25 = vrot.slane %v1193_v55, %v292_v35 }
  0xb9   :  { %v268_v23 = vpop.permute.xlu0 %267 }
  0xba   :  { %v199_v40 = vpop.permute.xlu1 %198 }
  0xbb   :  { %v214_v43 = vsel %vm208_vm2, %v195_v32, %v199_v40 }
  0xbc   :  { %v238_v46 = vmul.f32 %v224_v59, %v214_v43  ;;  %706 = vperm.xlu1 %915, %v692_v38   ;;  %v305_v43 = vrot.slane %v1198_v56, %v292_v35 }
  0xbd   :  { %v272_v19 = vpop.permute.xlu0 %271 }
  0xbe   :  { %v1297_v51 = vmul.f32 %v1115_v27, %v238_v46  ;;  %v287_v54 = vsel %vm281_vm3, %v268_v23, %v272_v19  ;;  %v203_v20 = vpop.permute.xlu1 %202 }
  0xbf   :  { %v311_v61 = vmul.f32 %v297_v44, %v287_v54  ;;  %v212_v62 = vsel %vm208_vm2, %v199_v40, %v203_v20 }
  0xc0   :  { %1712 = vst [vmem:[#allocation9_spill] sm:$0xff] %v1297_v51  ;;  %v239_v1 = vmul.f32 %v228_v42, %v212_v62 }
  0xc1   :  { %v1305_v2 = vmul.f32 %v1226_v21, %v311_v61  ;;  %v276_v59 = vpop.permute.xlu0 %275 }
  0xc2   :  { %v1308_v3 = vmul.f32 %v1115_v27, %v239_v1  ;;  %v285_v7 = vsel %vm281_vm3, %v272_v19, %v276_v59  ;;  %v207_v14 = vpop.permute.xlu1 %206 }
  0xc3   :  { %1713 = vst [vmem:[#allocation10_spill] sm:$0xff] %v1305_v2  ;;  %v312_v38 = vmul.f32 %v301_v0, %v285_v7  ;;  %v210_v40 = vsel %vm208_vm2, %v203_v20, %v207_v14  ;;  %v216_v42 = vsel %vm208_vm2, %v207_v14, %v195_v32 }
  0xc4   :  { %1714 = vst [vmem:[#allocation11_spill] sm:$0xff] %v1308_v3  ;;  %v237_v46 = vmul.f32 %v220_v58, %v216_v42  ;;  %v240_v54 = vmul.f32 %v232_v57, %v210_v40 }
  0xc5   :  { %v1319_v61 = vmul.f32 %v1226_v21, %v312_v38  ;;  %v280_v62 = vpop.permute.xlu0 %279 }
  0xc6   :  { %v1322_v19 = vmul.f32 %v1115_v27, %v237_v46  ;;  %v1325_v1 = vmul.f32 %v1115_v27, %v240_v54  ;;  %v283_v20 = vsel %vm281_vm3, %v276_v59, %v280_v62  ;;  %v289_v32 = vsel %vm281_vm3, %v280_v62, %v268_v23  ;;  %v1331_v7 = vpop.permute.xlu1 %343 }
  0xc7   :  { %1715 = vst [vmem:[#allocation12_spill] sm:$0xff] %v1319_v61  ;;  %v310_v58 = vmul.f32 %v293_v25, %v289_v32  ;;  %v313_v57 = vmul.f32 %v305_v43, %v283_v20  ;;  %v389_v23 = vsub.s32 5, %v1128_v31 }
  0xc8   :  { %1716 = vst [vmem:[#allocation13_spill] sm:$0xff] %v1322_v19  ;;  %1717 = vst [vmem:[#allocation14_spill] sm:$0xff] %v1325_v1 }
  0xc9   :  { %v1334_v35 = vmul.f32 %v1226_v21, %v310_v58  ;;  %v1337_v14 = vmul.f32 %v1226_v21, %v313_v57  ;;  %v1339_v38 = vpop.permute.xlu0 %416  ;;  %v390_v21 = vrot.slane %v1193_v55, %v389_v23  ;;  %v1361_v2 = vrot.slane %v1198_v56, %v389_v23 }
  0xca   :  { %v266_v27 = vpop.permute.xlu1 %265  ;;  %v398_v18 = vrot.slane %v1169_v45, %v389_v23 }
  0xcb   :  { %1718 = vst [vmem:[#allocation15_spill] sm:$0xff] %v1334_v35  ;;  %1719 = vst [vmem:[#allocation16_spill] sm:$0xff] %v1337_v14 }
  0xcd   :  { %v363_v40 = vpop.permute.xlu0 %362 }
  0xce   :  { %v270_v42 = vpop.permute.xlu1 %269 }
  0xcf   :  { %v286_v59 = vsel %vm281_vm3, %v266_v27, %v270_v42 }
  0xd0   :  { %v307_v46 = vmul.f32 %v297_v44, %v286_v59 }
  0xd1   :  { %v367_v54 = vpop.permute.xlu0 %366 }
  0xd2   :  { %v1346_v62 = vmul.f32 %v1255_v52, %v307_v46  ;;  %v274_v20 = vpop.permute.xlu1 %273  ;;  %v383_v58 = vsel %vm378_vm4, %v363_v40, %v367_v54 }
  0xd3   :  { %v284_v32 = vsel %vm281_vm3, %v270_v42, %v274_v20  ;;  %v403_v59 = vmul.f32 %v390_v21, %v383_v58 }
  0xd4   :  { %v308_v57 = vmul.f32 %v301_v0, %v284_v32 }
  0xd5   :  { %v371_v5 = vpop.permute.xlu0 %370 }
  0xd6   :  { %v1354_v14 = vmul.f32 %v1255_v52, %v308_v57  ;;  %v278_v44 = vpop.permute.xlu1 %277 }
  0xd7   :  { %v282_v46 = vsel %vm281_vm3, %v274_v20, %v278_v44  ;;  %v288_v61 = vsel %vm281_vm3, %v278_v44, %v266_v27 }
  0xd8   :  { %1720 = vst [vmem:[#allocation17_spill] sm:$0xff] %v1354_v14  ;;  %v306_v42 = vmul.f32 %v293_v25, %v288_v61  ;;  %v309_v35 = vmul.f32 %v305_v43, %v282_v46  ;;  %v71_v46 = vsub.s32 0, %v1128_v31 }
  0xd9   :  { %v375_v1 = vpop.permute.xlu0 %374 }
  0xda   :  { %v1364_v0 = vmul.f32 %v1255_v52, %v306_v42  ;;  %v1367_v32 = vmul.f32 %v1255_v52, %v309_v35  ;;  %v385_v58 = vsel %vm378_vm4, %v375_v1, %v363_v40  ;;  %v413_v57 = vpop.permute.xlu1 %412  ;;  %v462_v42 = vsub.s32 6, %v1128_v31 }
  0xdb   :  { %v406_v20 = vmul.f32 %v1361_v2, %v385_v58  ;;  %v1372_v3 = vmul.f32 %v413_v57, %v403_v59  ;;  %v76_v59 = vrot.slane %v1151_v39, %v71_v46 }
  0xdc   :  { %1721 = vst [vmem:[#allocation18_spill] sm:$0xff] %v1367_v32  ;;  %v1396_v31 = vrot.slane %v1193_v55, %v462_v42  ;;  %v1399_v63 = vrot.slane %v1151_v39, %v462_v42  ;;  %v381_v32 = vsel %vm378_vm4, %v367_v54, %v371_v5  ;;  %v1415_v53 = vrot.slane %v1198_v56, %v462_v42 }
  0xdd   :  { %1722 = vst [vmem:[#allocation19_spill] sm:$0xff] %v1372_v3  ;;  %v1374_v27 = vmul.f32 %v413_v57, %v406_v20  ;;  %v1376_v44 = vpop.permute.xlu0 %558  ;;  %v80_v20 = vrot.slane %v1169_v45, %v71_v46  ;;  %v394_v3 = vrot.slane %v1151_v39, %v389_v23 }
  0xde   :  { %1724 = vst [vmem:[#allocation21_spill] sm:$0xff] %v1376_v44  ;;  %v72_v44 = vrot.slane %v1193_v55, %v71_v46 }
  0xdf   :  { %1723 = vst [vmem:[#allocation20_spill] sm:$0xff] %v1374_v27  ;;  %v1378_v25 = vpop.permute.xlu1 %485  ;;  %v91_v55 = vmul.f32 %v80_v20, %v1122_v29 }
  0xe0   :  { %1725 = vst [vmem:[#allocation22_spill] sm:$0xff] %v1378_v25  ;;  %v84_v25 = vrot.slane %v1198_v56, %v71_v46  ;;  %v379_v46 = vsel %vm378_vm4, %v371_v5, %v375_v1  ;;  %v89_v39 = vmul.f32 %v72_v44, %v1137_v34  ;;  %v86_v5 = vmul.f32 %v76_v59, %v1141_v36 }
  0xe1   :  { %v1380_v43 = vpop.permute.xlu0 %437  ;;  %v404_v34 = vmul.f32 %v394_v3, %v381_v32  ;;  %v348_v36 = vmul.f32 %v1277_v16, %v1025_v12  ;;  %v1450_v12 = vmul.f32 %v1331_v7, %v1001_v8 }
  0xe2   :  { %v92_v54 = vmul.f32 %v84_v25, %v1133_v33  ;;  %v88_v29 = vmul.f32 %v84_v25, %v1175_v49  ;;  %v347_v33 = vmul.f32 %v1277_v16, %v1018_v11  ;;  %v1443_v49 = vmul.f32 %v1331_v7, %v994_v6 }
  0xe3   :  { %v1382_v61 = vpop.permute.xlu1 %489  ;;  %v420_v6 = vmul.f32 %v413_v57, %v404_v34 }
  0xe5   :  { %v442_v52 = vpop.permute.xlu0 %441 }
  0xe6   :  { %v457_v1 = vsel %vm451_vm5, %v1380_v43, %v442_v52 }
  0xe7   :  { %v365_v35 = vpop.permute.xlu1 %364 }
  0xe9   :  { %v446_v40 = vpop.permute.xlu0 %445 }
  0xeb   :  { %v369_v58 = vpop.permute.xlu1 %368 }
  0xec   :  { %v384_v27 = vsel %vm378_vm4, %v365_v35, %v369_v58 }
  0xed   :  { %v407_v51 = vmul.f32 %v390_v21, %v384_v27  ;;  %v450_v19 = vpop.permute.xlu0 %449  ;;  %v1409_v21 = vrot.slane %v1169_v45, %v462_v42  ;;  %v90_v27 = vmul.f32 %v76_v59, %v1113_v26  ;;  %v85_v26 = vmul.f32 %v72_v44, %v1179_v50 }
  0xee   :  { %v346_v42 = vmul.f32 %v1277_v16, %v1006_v9  ;;  %v1439_v50 = vmul.f32 %v1331_v7, %v985_v4  ;;  %v480_v9 = vmul.f32 %v1396_v31, %v457_v1  ;;  %v455_v4 = vsel %vm451_vm5, %v442_v52, %v446_v40 }
  0xef   :  { %v1406_v14 = vmul.f32 %v1339_v38, %v407_v51  ;;  %v373_v23 = vpop.permute.xlu1 %372  ;;  %v87_v51 = vmul.f32 %v80_v20, %v1155_v41  ;;  %v1435_v41 = vmul.f32 %v1277_v16, %v1032_v13  ;;  %v1454_v13 = vmul.f32 %v1331_v7, %v1013_v10 }
  0xf0   :  { %v453_v44 = vsel %vm451_vm5, %v446_v40, %v450_v19  ;;  %v382_v25 = vsel %vm378_vm4, %v369_v58, %v373_v23  ;;  %v459_v58 = vsel %vm451_vm5, %v450_v19, %v1380_v43 }
  0xf1   :  { %1726 = vst [vmem:[#allocation23_spill] sm:$0xff] %v1406_v14  ;;  %v1423_v45 = vpop.permute.xlu0 %635  ;;  %v405_v14 = vmul.f32 %v398_v18, %v379_v46  ;;  %v482_v46 = vmul.f32 %v1409_v21, %v453_v44  ;;  %v408_v1 = vmul.f32 %v394_v3, %v382_v25  ;;  %v1727_v3 = vld [vmem:[#allocation5_spill] sm:$0xff] }
  0xf3   :  { %v377_v59 = vpop.permute.xlu1 %376  ;;  %v421_v32 = vmul.f32 %v413_v57, %v405_v14  ;;  %v1474_v14 = vmul.f32 %v1399_v63, %v455_v4 }
  0xf4   :  { %v386_v11 = vsel %vm378_vm4, %v377_v59, %v365_v35  ;;  %v380_v8 = vsel %vm378_vm4, %v373_v23, %v377_v59 }
  0xf5   :  { %v410_v16 = vmul.f32 %v1361_v2, %v386_v11  ;;  %v1471_v2 = vmul.f32 %v1382_v61, %v480_v9 }
  0xf6   :  { %v96_v35 = vpop.permute.xlu0 %95 }
  0xf7   :  { %v1466_v10 = vmul.f32 %v1339_v38, %v410_v16  ;;  %v103_v7 = vmul.f32 %v96_v35, %v85_v26  ;;  %v104_v20 = vmul.f32 %v96_v35, %v86_v5  ;;  %v1468_v52 = vpop.permute.xlu1 %562  ;;  %v105_v57 = vmul.f32 %v96_v35, %v87_v51 }
  0xf8   :  { %v106_v40 = vmul.f32 %v96_v35, %v88_v29  ;;  %v409_v26 = vmul.f32 %v398_v18, %v380_v8  ;;  %v1731_v8 = vld [vmem:[#allocation8_spill] sm:$0xff] }
  0xf9   :  { %v184_v23 = vadd.f32 %v1248_v47, %v103_v7  ;;  %v185_v5 = vadd.f32 %v1229_v24, %v104_v20  ;;  %v186_v34 = vadd.f32 %v1237_v37, %v105_v57 }
  0xfa   :  { %v187_v59 = vadd.f32 %v1251_v48, %v106_v40  ;;  %v101_v9 = vpop.permute.xlu0 %100 }
  0xfb   :  { %v257_v51 = vadd.f32 %v1283_v28, %v184_v23  ;;  %v258_v29 = vadd.f32 %v1286_v30, %v185_v5  ;;  %v107_v11 = vmul.f32 %v101_v9, %v89_v39  ;;  %v108_v4 = vmul.f32 %v101_v9, %v90_v27  ;;  %v436_v19 = vpop.permute.xlu1 %435  ;;  %v1728_v28 = vld [vmem:[#allocation17_spill] sm:$0xff]  ;;  %v1729_v30 = vld [vmem:[#allocation18_spill] sm:$0xff]  ;;  %v1730_v27 = vld [vmem:[#allocation7_spill] sm:$0xff] }
  0xfc   :  { %v259_v43 = vadd.f32 %v1263_v60, %v186_v34  ;;  %v260_v47 = vadd.f32 %v1275_v15, %v187_v59  ;;  %v109_v16 = vmul.f32 %v101_v9, %v91_v55  ;;  %v110_v24 = vmul.f32 %v101_v9, %v92_v54  ;;  %v1732_v55 = vld [vmem:[#allocation13_spill] sm:$0xff]  ;;  %v1735_v23 = vld [vmem:[#allocation14_spill] sm:$0xff]  ;;  %v1736_v9 = vld [vmem:[#allocation15_spill] sm:$0xff] }
  0xfd   :  { %v330_v18 = vadd.f32 %v1364_v0, %v257_v51  ;;  %v331_v37 = vadd.f32 %v1346_v62, %v258_v29  ;;  %v188_v48 = vadd.f32 %v1221_v17, %v107_v11  ;;  %v189_v44 = vadd.f32 %v1727_v3, %v108_v4  ;;  %v1733_v54 = vld [vmem:[#allocation9_spill] sm:$0xff]  ;;  %v1734_v17 = vld [vmem:[#allocation11_spill] sm:$0xff]  ;;  %v1737_v29 = vld [vmem:[#allocation10_spill] sm:$0xff] }
  0xfe   :  { %v332_v25 = vadd.f32 %v1728_v28, %v259_v43  ;;  %v333_v39 = vadd.f32 %v1729_v30, %v260_v47  ;;  %v190_v35 = vadd.f32 %v1730_v27, %v109_v16  ;;  %v191_v60 = vadd.f32 %v1731_v8, %v110_v24  ;;  %v1496_v7 = vpop.permute.xlu0 %512  ;;  %v1738_v4 = vld [vmem:[#allocation19_spill] sm:$0xff]  ;;  %v1739_v16 = vld [vmem:[#allocation12_spill] sm:$0xff]  ;;  %v1741_v3 = vld [vmem:[#allocation22_spill] sm:$0xff] }
  0xff   :  { %v261_v15 = vadd.f32 %v1732_v55, %v188_v48  ;;  %v262_v0 = vadd.f32 %v1733_v54, %v189_v44  ;;  %v440_v20 = vpop.permute.xlu1 %439  ;;  %v354_v62 = vadd.f32 %v346_v42, %v330_v18  ;;  %v355_v57 = vadd.f32 %v347_v33, %v331_v37  ;;  %v1740_v42 = vld [vmem:[#allocation16_spill] sm:$0xff] }
 0x100   :  { %v263_v40 = vadd.f32 %v1734_v17, %v190_v35  ;;  %v264_v5 = vadd.f32 %v1735_v23, %v191_v60  ;;  %v456_v34 = vsel %vm451_vm5, %v436_v19, %v440_v20  ;;  %v356_v59 = vadd.f32 %v348_v36, %v332_v25  ;;  %v1742_v35 = vld [vmem:[#allocation20_spill] sm:$0xff] }
 0x101   :  { %v334_v51 = vadd.f32 %v1736_v9, %v261_v15  ;;  %v335_v11 = vadd.f32 %v1737_v29, %v262_v0  ;;  %v427_v43 = vadd.f32 %v1738_v4, %v354_v62  ;;  %v476_v47 = vmul.f32 %v1396_v31, %v456_v34 }
 0x102   :  { %v336_v24 = vadd.f32 %v1739_v16, %v263_v40  ;;  %v337_v33 = vadd.f32 %v1740_v42, %v264_v5  ;;  %v428_v18 = vadd.f32 %v420_v6, %v355_v57  ;;  %v357_v37 = vadd.f32 %v1435_v41, %v333_v39  ;;  %v517_v36 = vpop.permute.xlu0 %516  ;;  %v1746_v42 = vld [vmem:[#allocation3_spill] sm:$0xff] }
 0x103   :  { %v424_v48 = vmul.f32 %v1339_v38, %v408_v1  ;;  %v492_v44 = vmul.f32 %v1741_v3, %v476_v47  ;;  %v444_v28 = vpop.permute.xlu1 %443  ;;  %v429_v25 = vadd.f32 %v421_v32, %v356_v59  ;;  %v358_v30 = vadd.f32 %v1439_v50, %v334_v51  ;;  %v1743_v1 = vld [vmem:[#allocation23_spill] sm:$0xff] }
 0x104   :  { %v425_v27 = vmul.f32 %v1339_v38, %v409_v26  ;;  %v454_v31 = vsel %vm451_vm5, %v440_v20, %v444_v28  ;;  %v430_v8 = vadd.f32 %v1742_v35, %v357_v37  ;;  %v360_v6 = vadd.f32 %v1450_v12, %v336_v24 }
 0x105   :  { %v1519_v60 = vadd.f32 %v492_v44, %v427_v43  ;;  %v477_v41 = vmul.f32 %v1399_v63, %v454_v31  ;;  %v431_v39 = vadd.f32 %v1743_v1, %v358_v30  ;;  %v359_v55 = vadd.f32 %v1443_v49, %v335_v11  ;;  %v1745_v43 = vld [vmem:[#allocation6_spill] sm:$0xff] }
 0x106   :  { %v483_v32 = vmul.f32 %v1415_v53, %v459_v58  ;;  %v498_v50 = vmul.f32 %v1382_v61, %v482_v46  ;;  %v433_v38 = vadd.f32 %v425_v27, %v360_v6  ;;  %v361_v26 = vadd.f32 %v1454_v13, %v337_v33  ;;  %v521_v13 = vpop.permute.xlu0 %520  ;;  %v874_v27 = vld [vmem:[%s1692_s2 + $0x28] ss:$0 sm:$0xff] }
 0x107   :  { %v497_v15 = vmul.f32 %v1382_v61, %v1474_v14  ;;  %v493_v12 = vmul.f32 %v1741_v3, %v477_v41  ;;  %v448_v54 = vpop.permute.xlu1 %447  ;;  %v1531_v0 = vadd.f32 %v1471_v2, %v431_v39  ;;  %v432_v63 = vadd.f32 %v424_v48, %v359_v55 }
 0x108   :  { %v452_v49 = vsel %vm451_vm5, %v444_v28, %v448_v54  ;;  %v458_v58 = vsel %vm451_vm5, %v448_v54, %v436_v19  ;;  %v1537_v46 = vadd.f32 %v498_v50, %v433_v38  ;;  %v499_v2 = vmul.f32 %v1382_v61, %v483_v32  ;;  %v1748_v32 = vld [vmem:[#allocation21_spill] sm:$0xff] }
 0x109   :  { %v1539_v20 = vadd.f32 %v493_v12, %v428_v18  ;;  %v478_v14 = vmul.f32 %v1409_v21, %v452_v49  ;;  %v479_v62 = vmul.f32 %v1415_v53, %v458_v58  ;;  %v1543_v57 = vadd.f32 %v497_v15, %v432_v63  ;;  %v1747_v18 = vld [vmem:[#allocation4_spill] sm:$0xff] }
 0x10a   :  { %v434_v17 = vadd.f32 %v1466_v10, %v361_v26  ;;  %v582_v21 = vpop.permute.xlu0 %581  ;;  %v1744_v10 = vld [vmem:[#allocation2_spill] sm:$0xff]  ;;  %v525_v44 = vsel %vm524_vm6, %v517_v36, %v521_v13  ;;  %v875_v26 = vld [vmem:[%s1692_s2 + $0x30] ss:$0 sm:$0xff] }
 0x10b   :  { %v494_v40 = vmul.f32 %v1741_v3, %v478_v14  ;;  %v495_v23 = vmul.f32 %v1741_v3, %v479_v62  ;;  %v1549_v19 = vpop.permute.xlu1 %631  ;;  %v535_v4 = vsub.s32 7, %v1744_v10  ;;  %v527_v3 = vsel %vm524_vm6, %v1496_v7, %v517_v36 }
 0x10c   :  { %v1551_v5 = vadd.f32 %v499_v2, %v434_v17 }
 0x10d   :  { %v1553_v34 = vadd.f32 %v494_v40, %v429_v25  ;;  %v1555_v59 = vadd.f32 %v495_v23, %v430_v8  ;;  %v536_v47 = vrot.slane %v1745_v43, %v535_v4  ;;  %v540_v33 = vrot.slane %v1746_v42, %v535_v4 }
 0x10e   :  { %v586_v51 = vpop.permute.xlu0 %585  ;;  %v544_v37 = vrot.slane %v1747_v18, %v535_v4  ;;  %v548_v28 = vrot.slane %v1198_v56, %v535_v4  ;;  %v876_v56 = vld [vmem:[%s1692_s2 + $0x38] ss:$0 sm:$0xff] }
 0x10f   :  { %v509_v53 = vpop.permute.xlu1 %508  ;;  %v602_v36 = vsel %vm597_vm7, %v582_v21, %v586_v51  ;;  %v550_v41 = vmul.f32 %v540_v33, %v527_v3 }
 0x110   :  { %v529_v16 = vsel %vm524_vm6, %v509_v53, %v1496_v7  ;;  %v531_v30 = vsel %vm524_vm6, %v521_v13, %v509_v53  ;;  %v873_v7 = vld [vmem:[%s1692_s2 + $0x20] ss:$0 sm:$0xff]  ;;  %v551_v1 = vmul.f32 %v544_v37, %v525_v44 }
 0x111   :  { %v549_v25 = vmul.f32 %v536_v47, %v529_v16  ;;  %v552_v55 = vmul.f32 %v548_v28, %v531_v30  ;;  %v622_v12 = vmul.f32 %v873_v7, %v602_v36  ;;  %v566_v2 = vmul.f32 %v1748_v32, %v550_v41 }
 0x112   :  { %v590_v61 = vpop.permute.xlu0 %589  ;;  %v567_v17 = vmul.f32 %v1748_v32, %v551_v1 }
 0x113   :  { %v511_v9 = vpop.permute.xlu1 %510  ;;  %v600_v31 = vsel %vm597_vm7, %v586_v51, %v590_v61  ;;  %v565_v50 = vmul.f32 %v1748_v32, %v549_v25  ;;  %v568_v23 = vmul.f32 %v1748_v32, %v552_v55  ;;  %v574_v10 = vadd.f32 %v566_v2, %v1539_v20 }
 0x114   :  { %v623_v38 = vmul.f32 %v874_v27, %v600_v31  ;;  %v638_v4 = vmul.f32 %v1549_v19, %v622_v12  ;;  %v575_v42 = vadd.f32 %v567_v17, %v1553_v34 }
 0x115   :  { %v576_v20 = vadd.f32 %v568_v23, %v1555_v59  ;;  %v917_v23 = vld [vmem:[%s1695_s4 + $0x8] sm:$0xff]  }
 0x116   :  { %v594_v48 = vpop.permute.xlu0 %593  ;;  %v639_v53 = vmul.f32 %v1549_v19, %v623_v38 }
 0x117   :  { %v515_v29 = vpop.permute.xlu1 %514  ;;  %v604_v8 = vsel %vm597_vm7, %v594_v48, %v582_v21  ;;  %v598_v15 = vsel %vm597_vm7, %v590_v61, %v594_v48  ;;  %v573_v21 = vadd.f32 %v565_v50, %v1519_v60 }
 0x118   :  { %v530_v39 = vsel %vm524_vm6, %v511_v9, %v515_v29  ;;  %v625_v54 = vmul.f32 %v876_v56, %v604_v8  ;;  %v624_v40 = vmul.f32 %v875_v26, %v598_v15  ;;  %v647_v18 = vadd.f32 %v639_v53, %v574_v10 }
 0x119   :  { %v553_v58 = vmul.f32 %v536_v47, %v530_v39 }
 0x11a   :  { %v641_v43 = vmul.f32 %v1549_v19, %v625_v54  ;;  %v640_v60 = vmul.f32 %v1549_v19, %v624_v40  ;;  %v659_v48 = vpop.permute.xlu0 %658  ;;  %v1749_v40 = vmov 0  }
 0x11b   :  { %v519_v11 = vpop.permute.xlu1 %518  ;;  %v569_v47 = vmul.f32 %v1468_v52, %v553_v58 }
 0x11c   :  { %v528_v6 = vsel %vm524_vm6, %v515_v29, %v519_v11  ;;  %v649_v31 = vadd.f32 %v641_v43, %v576_v20  ;;  %v648_v8 = vadd.f32 %v640_v60, %v575_v42 }
 0x11d   :  { %v554_v63 = vmul.f32 %v540_v33, %v528_v6  ;;  %v577_v19 = vadd.f32 %v569_v47, %v1531_v0  ;;  %v667_v6 = vadd.f32 %v659_v48, %v647_v18 }
 0x11e   :  { %v669_v50 = vadd.f32 %v659_v48, %v649_v31 }
 0x11f   :  { %v523_v24 = vpop.permute.xlu1 %522  ;;  %v570_v29 = vmul.f32 %v1468_v52, %v554_v63 }
 0x120   :  { %v526_v13 = vsel %vm524_vm6, %v519_v11, %v523_v24  ;;  %v532_v14 = vsel %vm524_vm6, %v523_v24, %v511_v9 }
 0x121   :  { %v555_v61 = vmul.f32 %v544_v37, %v526_v13  ;;  %v556_v11 = vmul.f32 %v548_v28, %v532_v14  ;;  %v646_v37 = vadd.f32 %v638_v4, %v573_v21  ;;  %v578_v30 = vadd.f32 %v570_v29, %v1543_v57 }
 0x122   :  { %v677_v13 = vmax.f32 %v669_v50, 0.0 }
 0x123   :  { %v584_v35 = vpop.permute.xlu1 %583  ;;  %v571_v3 = vmul.f32 %v1468_v52, %v555_v61  ;;  %v572_v44 = vmul.f32 %v1468_v52, %v556_v11  ;;  %v666_v41 = vadd.f32 %v659_v48, %v646_v37  ;;  %v702_v61 = vpop.permute.xlu0 %701 }
 0x125   :  { %v579_v1 = vadd.f32 %v571_v3, %v1537_v46  ;;  %v580_v55 = vadd.f32 %v572_v44, %v1551_v5  ;;  %v674_v12 = vmax.f32 %v666_v41, 0.0  ;;  %v916_v5 = vld [vmem:[%s1695_s4] sm:$0xff]  }
 0x127   :  { %v588_v49 = vpop.permute.xlu1 %587 }
 0x128   :  { %v603_v62 = vsel %vm597_vm7, %v584_v35, %v588_v49 }
 0x129   :  { %v626_v51 = vmul.f32 %v873_v7, %v603_v62 }
 0x12b   :  { %v592_v9 = vpop.permute.xlu1 %591  ;;  %v642_v33 = vmul.f32 %v1423_v45, %v626_v51 }
 0x12c   :  { %v601_v16 = vsel %vm597_vm7, %v588_v49, %v592_v9 }
 0x12d   :  { %v627_v24 = vmul.f32 %v874_v27, %v601_v16  ;;  %v650_v52 = vadd.f32 %v642_v33, %v577_v19 }
 0x12f   :  { %v643_v28 = vmul.f32 %v1423_v45, %v627_v24  ;;  %v596_v25 = vpop.permute.xlu1 %595 }
 0x130   :  { %v599_v34 = vsel %vm597_vm7, %v592_v9, %v596_v25  ;;  %v605_v27 = vsel %vm597_vm7, %v596_v25, %v584_v35 }
 0x131   :  { %v628_v59 = vmul.f32 %v875_v26, %v599_v34  ;;  %v629_v7 = vmul.f32 %v876_v56, %v605_v27  ;;  %v651_v36 = vadd.f32 %v643_v28, %v578_v30  ;;  %v668_v56 = vadd.f32 %v659_v48, %v648_v8 }
 0x132   :  { %v675_v26 = vmax.f32 %v667_v6, 0.0 }
 0x133   :  { %v644_v57 = vmul.f32 %v1423_v45, %v628_v59  ;;  %v645_v0 = vmul.f32 %v1423_v45, %v629_v7  ;;  %v664_v39 = vpop.permute.xlu1 %663  ;;  %v676_v45 = vmax.f32 %v668_v56, 0.0  ;;  %v712_v7 = vpop.permute.xlu0 %711 }
 0x134   :  { %v671_v32 = vadd.f32 %v664_v39, %v651_v36  ;;  %v670_v22 = vadd.f32 %v664_v39, %v650_v52 }
 0x135   :  { %v653_v35 = vadd.f32 %v645_v0, %v580_v55  ;;  %v652_v38 = vadd.f32 %v644_v57, %v579_v1 }
 0x136   :  { %v679_v15 = vmax.f32 %v671_v32, 0.0  ;;  %v678_v54 = vmax.f32 %v670_v22, 0.0 }
 0x137   :  { %v673_v63 = vadd.f32 %v664_v39, %v653_v35  ;;  %v672_v49 = vadd.f32 %v664_v39, %v652_v38  ;;  %v697_v21 = vpop.permute.xlu1 %696 }
 0x138   :  { %v687_v46 = vpack.c.bf16 %v679_v15, %v675_v26  ;;  %v686_v58 = vpack.c.bf16 %v678_v54, %v674_v12 }
 0x139   :  { %v681_v14 = vmax.f32 %v673_v63, 0.0  ;;  %v680_v62 = vmax.f32 %v672_v49, 0.0 }
 0x13a   :  { %731 = vmatprep.subr.bf16.mxu0 %v687_v46 }
 0x13b   :  { %732 = vmatpush1.bf16.msra.mxu0 %v686_v58  ;;  %v689_v2 = vpack.c.bf16 %v681_v14, %v677_v13  ;;  %v688_v17 = vpack.c.bf16 %v680_v62, %v676_v45  ;;  %v707_v30 = vpop.permute.xlu1 %706 }
 0x13d   :  { %784 = vmatprep.subr.bf16.mxu1 %v689_v2 }
 0x13e   :  { %879 = vmatmul.mubr.msk.bf16.vlgmr.msra.gmra.mrb[0].mxu0 %vm724_vm8, %v916_v5  ;;  %785 = vmatpush1.bf16.msra.mxu1 %v688_v17 }
 0x13f   :  { %773 = vmatprep.mubr.bf16.mxu0 %v1749_v40 }
 0x141   :  { %881 = vmatmul.mubr.msk.bf16.vlgmr.msra.gmra.mrb[0].mxu1 %vm724_vm8, %v916_v5 }
 0x142   :  { %826 = vmatprep.mubr.bf16.mxu1 %v1749_v40 }
 0x146   :  { %880 = vmatmul.mubr.msk.bf16.gmra.mrb[4].mxu0 %vm724_vm8, %v917_v23 }
 0x149   :  { %882 = vmatmul.mubr.msk.bf16.gmra.mrb[4].mxu1 %vm724_vm8, %v917_v23 }
 0x211   :  { %v765_v53 = vpop.f32.mrb[0].mxu0 }
 0x212   :  { %v766_v51 = vadd.f32 %v765_v53, %v697_v21  ;;  %v767_v29 = vpop.f32.mrb[1].mxu0 }
 0x213   :  { %v768_v11 = vadd.f32 %v767_v29, %v697_v21  ;;  %v769_v9 = vpop.f32.mrb[2].mxu0 }
 0x214   :  { %v837_v10 = vmax.f32 %v766_v51, 0.0  ;;  %v770_v4 = vadd.f32 %v769_v9, %v702_v61  ;;  %v771_v43 = vpop.f32.mrb[3].mxu0  ;;  %v818_v47 = vpop.f32.mrb[0].mxu1 }
 0x215   :  { %v838_v16 = vmax.f32 %v768_v11, 0.0  ;;  %v772_v60 = vadd.f32 %v771_v43, %v702_v61  ;;  %v819_v24 = vadd.f32 %v818_v47, %v697_v21  ;;  %v820_v42 = vpop.f32.mrb[1].mxu1 }
 0x216   :  { %853 = vst [vmem:[%s1696_s6] sm:$0xff] %v837_v10  ;;  %v841_v33 = vmax.f32 %v770_v4, 0.0  ;;  %v821_v18 = vadd.f32 %v820_v42, %v697_v21  ;;  %v822_v37 = vpop.f32.mrb[2].mxu1 }
 0x217   :  { %854 = vst [vmem:[%s1696_s6 + $0x8] sm:$0xff] %v838_v16  ;;  %v842_v20 = vmax.f32 %v772_v60, 0.0  ;;  %v839_v48 = vmax.f32 %v819_v24, 0.0  ;;  %v823_v3 = vadd.f32 %v822_v37, %v702_v61  ;;  %v824_v44 = vpop.f32.mrb[3].mxu1 }
 0x218   :  { %857 = vst [vmem:[%s1696_s6 + $0x20] sm:$0xff] %v841_v33  ;;  %v840_v28 = vmax.f32 %v821_v18, 0.0  ;;  %v825_v25 = vadd.f32 %v824_v44, %v702_v61 }
 0x219   :  { %858 = vst [vmem:[%s1696_s6 + $0x28] sm:$0xff] %v842_v20  ;;  %855 = vst [vmem:[%s1696_s6 + $0x10] sm:$0xff] %v839_v48  ;;  %v843_v19 = vmax.f32 %v823_v3, 0.0  ;;  %v775_v34 = vpop.f32.mrb[4].mxu0 }
 0x21a   :  { %856 = vst [vmem:[%s1696_s6 + $0x18] sm:$0xff] %v840_v28  ;;  %v844_v27 = vmax.f32 %v825_v25, 0.0  ;;  %v776_v31 = vadd.f32 %v775_v34, %v707_v30  ;;  %v777_v59 = vpop.f32.mrb[5].mxu0 }
 0x21b   :  { %859 = vst [vmem:[%s1696_s6 + $0x30] sm:$0xff] %v843_v19  ;;  %v778_v36 = vadd.f32 %v777_v59, %v707_v30  ;;  %v779_v8 = vpop.f32.mrb[6].mxu0 }
 0x21c   :  { %860 = vst [vmem:[%s1696_s6 + $0x38] sm:$0xff] %v844_v27  ;;  %v845_v6 = vmax.f32 %v776_v31, 0.0  ;;  %v780_v52 = vadd.f32 %v779_v8, %v712_v7  ;;  %v781_v41 = vpop.f32.mrb[7].mxu0  ;;  %v828_v1 = vpop.f32.mrb[4].mxu1 }
 0x21d   :  { %v846_v57 = vmax.f32 %v778_v36, 0.0  ;;  %v782_v0 = vadd.f32 %v781_v41, %v712_v7  ;;  %v829_v39 = vadd.f32 %v828_v1, %v707_v30  ;;  %v830_v55 = vpop.f32.mrb[5].mxu1 }
 0x21e   :  { %861 = vst [vmem:[%s1696_s6 + $0x40] sm:$0xff] %v845_v6  ;;  %v849_v32 = vmax.f32 %v780_v52, 0.0  ;;  %v831_v22 = vadd.f32 %v830_v55, %v707_v30  ;;  %v832_v35 = vpop.f32.mrb[6].mxu1 }
 0x21f   :  { %862 = vst [vmem:[%s1696_s6 + $0x48] sm:$0xff] %v846_v57  ;;  %v850_v50 = vmax.f32 %v782_v0, 0.0  ;;  %v847_v38 = vmax.f32 %v829_v39, 0.0  ;;  %v833_v56 = vadd.f32 %v832_v35, %v712_v7  ;;  %v834_v26 = vpop.f32.mrb[7].mxu1 }
 0x220   :  { %865 = vst [vmem:[%s1696_s6 + $0x60] sm:$0xff] %v849_v32  ;;  %v848_v15 = vmax.f32 %v831_v22, 0.0  ;;  %v835_v12 = vadd.f32 %v834_v26, %v712_v7 }
 0x221   :  { %866 = vst [vmem:[%s1696_s6 + $0x68] sm:$0xff] %v850_v50  ;;  %863 = vst [vmem:[%s1696_s6 + $0x50] sm:$0xff] %v847_v38  ;;  %v851_v54 = vmax.f32 %v833_v56, 0.0 }
 0x222   :  { %864 = vst [vmem:[%s1696_s6 + $0x58] sm:$0xff] %v848_v15  ;;  %v852_v63 = vmax.f32 %v835_v12, 0.0 }
 0x223   :  { %867 = vst [vmem:[%s1696_s6 + $0x70] sm:$0xff] %v851_v54 }
 0x224   :  { %868 = vst [vmem:[%s1696_s6 + $0x78] sm:$0xff] %v852_v63 }

</bundles_post_ra>
